<compile_context>
chip_gen: v7x
topology: tpu7x:2x2x1
jax: 0.10.0
libtpu: 0.0.40
codegen_flags: <defaults>
</compile_context>

<pallas_src>
import functools

import jax
import jax.numpy as jnp
from jax.experimental import pallas as pl
from jax.experimental.pallas import tpu as pltpu

WINDOW_SIZE = 24
H1 = 64
H2 = 64
OUT = 1


def _default_elementwise_dtype():
    """bf16 elementwise on v6e/v7x; f32 on older chips (no bf16 VPU on v5e)."""
    try:
        kind = jax.devices()[0].device_kind.lower()
    except Exception:  # no devices / unknown backend -> safe default
        return jnp.bfloat16
    if any(tag in kind for tag in ("v2", "v3", "v4", "v5")):
        return jnp.float32
    return jnp.bfloat16


def fnn_kernel(xT_ref, w1a_ref, w2_ref, b2_ref, w3_ref, b3_ref, o_ref,
               *, bf16_elementwise):
    """Transposed-layout fused MLP.

    xT_ref : (25, TILE_B) bf16  batch on lanes; row 24 is all-ones (bias-1 fold)
    w1a_ref: (64, 25)     bf16  [w1 | b1] augmented weight, VMEM-resident
    w2_ref : (64, 64)     bf16  VMEM-resident
    b2_ref : (64, 1)      bf16 (v6e/v7x) or f32 (v5e)
    w3_ref : (1, 64)      bf16
    b3_ref : (1, 1)       f32
    o_ref  : (1, TILE_B)  f32   lane-dense output slab
    """
    xT = xT_ref[...]                                                     # (25, TB) bf16

    # Layer 1: bias already folded into the MXU via the ones row.
    h1 = jnp.dot(w1a_ref[...], xT, preferred_element_type=jnp.float32)   # (64, TB) f32
    if bf16_elementwise:
        h1 = jnp.maximum(h1.astype(jnp.bfloat16), 0)                     # bf16 ReLU
    else:
        h1 = jnp.maximum(h1, 0.0).astype(jnp.bfloat16)                   # f32 ReLU (v5e)

    # Layer 2.
    h2 = jnp.dot(w2_ref[...], h1, preferred_element_type=jnp.float32)    # (64, TB) f32
    if bf16_elementwise:
        h2 = jnp.maximum(h2.astype(jnp.bfloat16) + b2_ref[...], 0)       # bf16 add+ReLU
    else:
        h2 = jnp.maximum(h2 + b2_ref[...], 0.0).astype(jnp.bfloat16)     # f32 path (v5e)

    # Layer 3 (output head): f32 bias add, f32 output.
    y = jnp.dot(w3_ref[...], h2, preferred_element_type=jnp.float32)     # (1, TB) f32
    o_ref[...] = (y + b3_ref[...]).astype(o_ref.dtype)


def fnn_forward(x, prepared, *, tile_b=16384, vmem_limit_bytes=None):
    """x: (B, window_size) float32 (extra dims flattened).  prepared: prepare_params()."""
    assert tile_b % 128 == 0, "tile_b must be a multiple of 128 (lane width)"
    B = x.shape[0]
    x = x.reshape(B, -1)                       # mirrors x.view(x.size(0), -1)
    assert x.shape[1] == WINDOW_SIZE

    # Don't use a tile wider than the (128-padded) batch itself.
    tile_b = min(tile_b, pl.cdiv(B, 128) * 128)
    n_tiles = pl.cdiv(B, tile_b)
    b_pad = n_tiles * tile_b

    # Single fusable pass: transpose + bf16 cast + ones row (bias-1 fold) + lane pad.
    # Padded columns are zero and their outputs are sliced off below.
    xT = jnp.concatenate(
        [x.T.astype(jnp.bfloat16), jnp.ones((1, B), jnp.bfloat16)], axis=0
    )                                                                   # (25, B)
    if b_pad != B:
        xT = jnp.pad(xT, ((0, 0), (0, b_pad - B)))                      # (25, b_pad)

    w1a = prepared["w1a"]
    w2t, b2t = prepared["w2t"], prepared["b2t"]
    w3t, b3t = prepared["w3t"], prepared["b3t"]
    bf16_ew = b2t.dtype == jnp.bfloat16

    # ~1 KB of VMEM per batch element (2x xT bufs + 2x out bufs + (64,TB)
    # intermediates) + headroom; floor at 32 MiB, cap at 48 MiB (safe on v7x's
    # 64 MiB physical VMEM, well under v5e/v6e's 128 MiB).
    if vmem_limit_bytes is None:
        vmem_limit_bytes = min(48 * 2**20,
                               max(32 * 2**20, tile_b * 1024 + (8 << 20)))

    # Full-array blocks with a constant index map -> stay VMEM-resident.
    resident = lambda a: pl.BlockSpec(a.shape, lambda i: (0, 0))

    y_pad = pl.pallas_call(
        functools.partial(fnn_kernel, bf16_elementwise=bf16_ew),
        out_shape=jax.ShapeDtypeStruct((OUT, b_pad), jnp.float32),
        grid=(n_tiles,),
        in_specs=[
            pl.BlockSpec((WINDOW_SIZE + 1, tile_b), lambda i: (0, i)),  # xT tile
            resident(w1a),
            resident(w2t), resident(b2t),
            resident(w3t), resident(b3t),
        ],
        out_specs=pl.BlockSpec((OUT, tile_b), lambda i: (0, i)),
        compiler_params=pltpu.CompilerParams(
            dimension_semantics=("parallel",),      # shards batch on v7x's 2 TCs
            vmem_limit_bytes=vmem_limit_bytes,
        ),
    )(xT, w1a, w2t, b2t, w3t, b3t)

    # Drop padded lanes and return PyTorch-shaped (B, 1).
    return y_pad[:, :B].T


def init_params(key):
    """PyTorch nn.Linear-like init (uniform(+-1/sqrt(fan_in))), stored (in, out) f32."""
    ks = jax.random.split(key, 6)

    def linear(kw, kb, fan_in, fan_out):
        bound = 1.0 / jnp.sqrt(fan_in)
        w = jax.random.uniform(kw, (fan_in, fan_out), jnp.float32, -bound, bound)
        b = jax.random.uniform(kb, (1, fan_out), jnp.float32, -bound, bound)
        return w, b

    w1, b1 = linear(ks[0], ks[1], WINDOW_SIZE, H1)
    w2, b2 = linear(ks[2], ks[3], H1, H2)
    w3, b3 = linear(ks[4], ks[5], H2, OUT)
    return dict(w1=w1, b1=b1, w2=w2, b2=b2, w3=w3, b3=b3)


def prepare_params(params, elementwise_dtype=None):
    """One-time layout/dtype prep.

    w1a = [w1 | b1] (64, 25) bf16  (bias-1 folded into the MXU via xT's ones row)
    w2t/w3t -> (out, in) bf16;  b2t -> (64, 1) in the elementwise dtype;
    b3t stays f32 (final output is f32).
    """
    if elementwise_dtype is None:
        elementwise_dtype = _default_elementwise_dtype()
    w1t = params["w1"].T                                       # (64, 24)
    b1c = params["b1"].T                                       # (64, 1)
    return dict(
        w1a=jnp.concatenate([w1t, b1c], axis=1).astype(jnp.bfloat16),  # (64, 25)
        w2t=params["w2"].T.astype(jnp.bfloat16),               # (64, 64)
        b2t=params["b2"].T.astype(elementwise_dtype),          # (64, 1)
        w3t=params["w3"].T.astype(jnp.bfloat16),               # (1, 64)
        b3t=params["b3"].T.astype(jnp.float32),                # (1, 1)
    )


def fnn_reference(x, params, elementwise_dtype=jnp.bfloat16):
    """Pure-JAX reference with the same precision recipe as the kernel."""
    bf = jnp.bfloat16
    xb = x.astype(bf)
    # Layer 1: bf16 operands, f32 accumulate, bias (as bf16) folded into the acc.
    h1 = jnp.dot(xb, params["w1"].astype(bf), preferred_element_type=jnp.float32)
    h1 = h1 + params["b1"].astype(bf).astype(jnp.float32)
    h1 = jnp.maximum(h1, 0.0).astype(bf)
    # Layer 2.
    h2 = jnp.dot(h1, params["w2"].astype(bf), preferred_element_type=jnp.float32)
    if elementwise_dtype == bf:
        h2 = jnp.maximum(h2.astype(bf) + params["b2"].astype(bf), 0)
    else:
        h2 = jnp.maximum(h2 + params["b2"], 0.0).astype(bf)
    # Layer 3.
    y = jnp.dot(h2, params["w3"].astype(bf), preferred_element_type=jnp.float32)
    return y + params["b3"]


if __name__ == "__main__":
    key = jax.random.PRNGKey(0)
    k_x, k_p = jax.random.split(key)

    # Small demo batch that still exercises padding + a multi-step grid
    # (B=300 with tile_b=128 -> padded to 384 -> 3 grid steps).
    B = 300
    x = jax.random.normal(k_x, (B, WINDOW_SIZE), jnp.float32)
    params = init_params(k_p)
    prepared = prepare_params(params)

    y = fnn_forward(x, prepared, tile_b=128)   # production default is tile_b=16384
    y = jax.block_until_ready(y)

    y_ref = fnn_reference(x, params, elementwise_dtype=prepared["b2t"].dtype)
    assert y.shape == (B, OUT)
    assert jnp.allclose(y, y_ref, atol=1e-2, rtol=1e-2), float(
        jnp.max(jnp.abs(y - y_ref))
    )

    print("KERNEL_OK")
</pallas_src>

<mosaic_0001>
module attributes {stable_mosaic.version = 11 : i64} {
  func.func @fnn_kernel(%arg0: i32, %arg1: memref<25x128xbf16, #tpu.memory_space<vmem>>, %arg2: memref<64x25xbf16, #tpu.memory_space<vmem>>, %arg3: memref<64x64xbf16, #tpu.memory_space<vmem>>, %arg4: memref<64x1xbf16, #tpu.memory_space<vmem>>, %arg5: memref<1x64xbf16, #tpu.memory_space<vmem>>, %arg6: memref<1x1xf32, #tpu.memory_space<vmem>>, %arg7: memref<1x128xf32, #tpu.memory_space<vmem>>) attributes {dimension_semantics = [#tpu.dimension_semantics<parallel>], iteration_bounds = array<i64: 3>, scalar_prefetch = 0 : i64, scratch_operands = 0 : i64, tpu.core_type = #tpu.core_type<tc>, window_params = [{transform_indices = @transform_0, window_bounds = array<i64: 25, 128>}, {pipeline_mode = #tpu.pipeline_mode<synchronous>, transform_indices = @transform_1, window_bounds = array<i64: 64, 25>}, {pipeline_mode = #tpu.pipeline_mode<synchronous>, transform_indices = @transform_2, window_bounds = array<i64: 64, 64>}, {pipeline_mode = #tpu.pipeline_mode<synchronous>, transform_indices = @transform_3, window_bounds = array<i64: 64, 1>}, {pipeline_mode = #tpu.pipeline_mode<synchronous>, transform_indices = @transform_4, window_bounds = array<i64: 1, 64>}, {pipeline_mode = #tpu.pipeline_mode<synchronous>, transform_indices = @transform_5, window_bounds = array<i64: 1, 1>}, {transform_indices = @transform_6, window_bounds = array<i64: 1, 128>}]} {
    %c0 = arith.constant 0 : index
    %c0_0 = arith.constant 0 : index
    %0 = vector.load %arg1[%c0, %c0_0] : memref<25x128xbf16, #tpu.memory_space<vmem>>, vector<25x128xbf16>
    %c0_1 = arith.constant 0 : index
    %c0_2 = arith.constant 0 : index
    %1 = vector.load %arg2[%c0_1, %c0_2] : memref<64x25xbf16, #tpu.memory_space<vmem>>, vector<64x25xbf16>
    %cst = arith.constant dense<0.000000e+00> : vector<64x128xf32>
    %2 = tpu.matmul %1, %0, %cst {dimension_numbers = #tpu.dot_dimension_numbers<[1], [0], [0], [1], [0, 0, 1, 1], [], []>} : vector<64x25xbf16>, vector<25x128xbf16>, vector<64x128xf32> -> vector<64x128xf32>
    %3 = arith.truncf %2 : vector<64x128xf32> to vector<64x128xbf16>
    %cst_3 = arith.constant 0.000000e+00 : bf16
    %4 = vector.broadcast %cst_3 : bf16 to vector<64x128xbf16>
    %5 = arith.maximumf %3, %4 : vector<64x128xbf16>
    %c0_4 = arith.constant 0 : index
    %c0_5 = arith.constant 0 : index
    %6 = vector.load %arg3[%c0_4, %c0_5] : memref<64x64xbf16, #tpu.memory_space<vmem>>, vector<64x64xbf16>
    %cst_6 = arith.constant dense<0.000000e+00> : vector<64x128xf32>
    %7 = tpu.matmul %6, %5, %cst_6 {dimension_numbers = #tpu.dot_dimension_numbers<[1], [0], [0], [1], [0, 0, 1, 1], [], []>} : vector<64x64xbf16>, vector<64x128xbf16>, vector<64x128xf32> -> vector<64x128xf32>
    %8 = arith.truncf %7 : vector<64x128xf32> to vector<64x128xbf16>
    %c0_7 = arith.constant 0 : index
    %c0_8 = arith.constant 0 : index
    %9 = vector.load %arg4[%c0_7, %c0_8] : memref<64x1xbf16, #tpu.memory_space<vmem>>, vector<64x1xbf16>
    %10 = vector.broadcast %9 : vector<64x1xbf16> to vector<64x128xbf16>
    %11 = arith.addf %8, %10 : vector<64x128xbf16>
    %cst_9 = arith.constant 0.000000e+00 : bf16
    %12 = vector.broadcast %cst_9 : bf16 to vector<64x128xbf16>
    %13 = arith.maximumf %11, %12 : vector<64x128xbf16>
    %c0_10 = arith.constant 0 : index
    %c0_11 = arith.constant 0 : index
    %14 = vector.load %arg5[%c0_10, %c0_11] : memref<1x64xbf16, #tpu.memory_space<vmem>>, vector<1x64xbf16>
    %cst_12 = arith.constant dense<0.000000e+00> : vector<1x128xf32>
    %15 = tpu.matmul %14, %13, %cst_12 {dimension_numbers = #tpu.dot_dimension_numbers<[1], [0], [0], [1], [0, 0, 1, 1], [], []>} : vector<1x64xbf16>, vector<64x128xbf16>, vector<1x128xf32> -> vector<1x128xf32>
    %c0_13 = arith.constant 0 : index
    %c0_14 = arith.constant 0 : index
    %16 = vector.load %arg6[%c0_13, %c0_14] : memref<1x1xf32, #tpu.memory_space<vmem>>, vector<1x1xf32>
    %17 = vector.broadcast %16 : vector<1x1xf32> to vector<1x128xf32>
    %18 = arith.addf %15, %17 : vector<1x128xf32>
    %c0_15 = arith.constant 0 : index
    %c0_16 = arith.constant 0 : index
    %19 = vector.load %arg7[%c0_15, %c0_16] : memref<1x128xf32, #tpu.memory_space<vmem>>, vector<1x128xf32>
    tpu.vector_store %arg7[%c0_15, %c0_16], %18 {strides = array<i32>} : memref<1x128xf32, #tpu.memory_space<vmem>>, vector<1x128xf32>,
    return
  }
  func.func @transform_0(%arg0: i32) -> (i32, i32) {
    %c0_i32 = arith.constant 0 : i32
    %c0_i32_0 = arith.constant 0 : i32
    return %c0_i32, %arg0 : i32, i32
  }
  func.func @transform_1(%arg0: i32) -> (i32, i32) {
    %c0_i32 = arith.constant 0 : i32
    %c0_i32_0 = arith.constant 0 : i32
    %c0_i32_1 = arith.constant 0 : i32
    return %c0_i32, %c0_i32_0 : i32, i32
  }
  func.func @transform_2(%arg0: i32) -> (i32, i32) {
    %c0_i32 = arith.constant 0 : i32
    %c0_i32_0 = arith.constant 0 : i32
    %c0_i32_1 = arith.constant 0 : i32
    return %c0_i32, %c0_i32_0 : i32, i32
  }
  func.func @transform_3(%arg0: i32) -> (i32, i32) {
    %c0_i32 = arith.constant 0 : i32
    %c0_i32_0 = arith.constant 0 : i32
    %c0_i32_1 = arith.constant 0 : i32
    return %c0_i32, %c0_i32_0 : i32, i32
  }
  func.func @transform_4(%arg0: i32) -> (i32, i32) {
    %c0_i32 = arith.constant 0 : i32
    %c0_i32_0 = arith.constant 0 : i32
    %c0_i32_1 = arith.constant 0 : i32
    return %c0_i32, %c0_i32_0 : i32, i32
  }
  func.func @transform_5(%arg0: i32) -> (i32, i32) {
    %c0_i32 = arith.constant 0 : i32
    %c0_i32_0 = arith.constant 0 : i32
    %c0_i32_1 = arith.constant 0 : i32
    return %c0_i32, %c0_i32_0 : i32, i32
  }
  func.func @transform_6(%arg0: i32) -> (i32, i32) {
    %c0_i32 = arith.constant 0 : i32
    %c0_i32_0 = arith.constant 0 : i32
    return %c0_i32, %arg0 : i32, i32
  }
}

</mosaic_0001>

<bundles_post_ra>
// kernel: tpu_custom_call.1
= control target key start
LH: loop header
LB: loop body
LE: loop exit
PB: predicated region body
PF: predicated region fallthrough
CT: control target
= control target key end

     0   :  { %s1249_s0 = inlined_call_operand.vmem [shape: bf16[25,384], index: 0, kind: input, shape index: {}]   ;;  %s1250_s1 = inlined_call_operand.vmem [shape: bf16[64,25], index: 1, kind: input, shape index: {}]   ;;  %s1251_s2 = inlined_call_operand.vmem [shape: bf16[64,64], index: 2, kind: input, shape index: {}]   ;;  %s1252_s3 = inlined_call_operand.vmem [shape: bf16[64,1], index: 3, kind: input, shape index: {}]   ;;  %s1253_s4 = inlined_call_operand.vmem [shape: bf16[1,64], index: 4, kind: input, shape index: {}]   ;;  %s1254_s5 = inlined_call_operand.<no memory space> [shape: f32[1,1], index: 5, kind: input, shape index: {}]   ;;  %s1255_s6 = inlined_call_operand.hbm [shape: f32[1,384], index: 6, kind: output, shape index: {}]  }
   0x1   :  { %v11_v0 = vstv %s1254_s5 }
   0x2   :  { %12 = vst [vmem:[#allocation2] sm:$0x1] %v11_v0 }
   0x3   :  { %13 = vsyncpa [#allocation5], 0 }
   0x4   :  { %15 = vsyncpa [#allocation5 + $0x1], 0  ;;  %s1072_s23 = smov 0   ;;  %s1074_s24 = smov 0  }
   0x5   :  { %s1076_s25 = smov 0   ;;  %s1078_s26 = smov 0  }
   0x6 LB: > { %s815_s5 = sadd.s32 4294967295, %s1026_s26   ;;  %s816_s27 = sadd.s32 4294967294, %s1026_s26   ;;  %s1026_s26 = sphi %s1078_s26, %s1261_s26   ;;  %s1022_s25 = sphi %s1076_s25, %s1260_s25   ;;  %s1018_s24 = sphi %s1074_s24, %s1259_s24   ;;  %s1014_s23 = sphi %s1072_s23, %s1258_s23  }
   0x7   : > { %s1095_s28 = sadd.s32 1, %s1026_s26   ;;  %s28_s29 = sadd.s32 1, %s1022_s25 }
   0x8   : > { %s25_s30 = ssub.s32 %s1026_s26, %s1095_s28  ;;  %p35_p0 = scmp.ne.s32.totalorder %s1022_s25, %s1018_s24 }
   0x9   : > { %p26_p1 = scmp.eq.s32.totalorder %s25_s30, 0  ;;  %p36_p2 = scmp.eq.s32.totalorder %s1026_s26, 0 }
   0xa   : > { %p170_p3 = scmp.eq.s32.totalorder %s815_s5, 2  ;;  %p175_p4 = scmp.ne.s32.totalorder %s1018_s24, %s1014_s23 }
   0xb   : > { %s1108_s7 = scalar_select %p26_p1, %s1022_s25, %s28_s29  }
   0xc   : > { %p37_p5 = por %p36_p2, %p35_p0  ;;  %p1110_p6 = por %p170_p3, %p35_p0 }
   0xd   : > { %p176_p7 = scmp.eq.s32.totalorder %s816_s27, 2  ;;  %p818_p9 = scmp.ge.s32.totalorder %s1026_s26, 3 }
   0xf   : > { %p1114_p8 = por %p176_p7, %p175_p4  ;;  %207 = sbr.rel (%p818_p9) target bundleno = 29 (0x1d), region = 36 }
  0x16   : > { %210 = sbr.rel (!%p37_p5) target bundleno = 29 (0x1d), region = 40  ;;  %s212_s10 = sand.u32 (%p37_p5), 1, %s1022_s25  }
  0x17   : > { %s820_s11 = sshll.u32 (%p37_p5), %s1026_s26, 2  ;;  %s819_s12 = sshll.u32 (%p37_p5), %s212_s10, 4 }
  0x18   : > { %s216_s15 = scalar_lea.vmem (%p37_p5), %s1249_s0, %s820_s11  ;;  %s214_s16 = scalar_lea.vmem (%p37_p5), [#allocation3], %s819_s12 }
  0x19   : > { %v232_v1 = vld [vmem:[%s216_s15] sm:$0xf] (%p37_p5)  ;;  %v234_v2 = vld [vmem:[%s216_s15 + $0xc] sm:$0xf] (%p37_p5)  ;;  %v236_v3 = vld [vmem:[%s216_s15 + $0x18] sm:$0xf] (%p37_p5) }
  0x1a   : > { %233 = vst [vmem:[%s214_s16] sm:$0xf] (%p37_p5), %v232_v1  ;;  %235 = vst [vmem:[%s214_s16 + $0x4] sm:$0xf] (%p37_p5), %v234_v2  ;;  %v238_v4 = vld [vmem:[%s216_s15 + $0x24] sm:$0xf] (%p37_p5) }
  0x1b   : > { %237 = vst [vmem:[%s214_s16 + $0x8] sm:$0xf] (%p37_p5), %v236_v3  ;;  %239 = vst [vmem:[%s214_s16 + $0xc] sm:$0xf] (%p37_p5), %v238_v4 }
  0x1d PF: > { %p821_p10 = scmp.ge.s32.totalorder %s1026_s26, 1  ;;  %p269_p11 = scmp.lt.s32.totalorder %s1026_s26, 4 }
  0x1f   : > { %p270_p12 = pnand %p821_p10, %p269_p11 }
  0x20   : > { %s1127_s17 = sand.u32 (!%p270_p12), 1, %s1018_s24   ;;  %vm361_vm0 = vcmask (!%p270_p12), 1043456   ;;  %vm362_vm1 = vcmask (!%p270_p12), 1044480   ;;  %v1028_v5 = vmov (!%p270_p12), 65535   ;;  %v956_v7 = vld [vmem:[%s1250_s1] sm:$0xff] (!%p270_p12)   ;;  %vm348_vm2 = vcmask (!%p270_p12), 203776  }
  0x21   : > { %273 = sbr.rel (%p270_p12) target bundleno = 743 (0x2e7), region = 81  ;;  %s822_s18 = sshll.u32 (!%p270_p12), %s1127_s17, 4  ;;  %v363_v6 = vsel (!%p270_p12), %vm361_vm0, 4294967295, %v1028_v5  ;;  %872 = vmatprep.mubr.msk.bf16.mxu0 (!%p270_p12), %vm348_vm2, %v956_v7  ;;  %v957_v12 = vld [vmem:[%s1250_s1 + $0x8] sm:$0xff] (!%p270_p12)   ;;  %v958_v13 = vld [vmem:[%s1250_s1 + $0x10] sm:$0xff] (!%p270_p12)   ;;  %v959_v14 = vld [vmem:[%s1250_s1 + $0x18] sm:$0xff] (!%p270_p12)   ;;  %v567_v48 = vlaneseq (!%p270_p12) }
  0x22   : > { %s278_s21 = scalar_lea.vmem (!%p270_p12), [#allocation3], %s822_s18  ;;  %v364_v9 = vsel (!%p270_p12), %vm362_vm1, %v363_v6, 0  ;;  %v1029_v15 = vmov (!%p270_p12), 0   ;;  %v960_v16 = vld [vmem:[%s1251_s2] sm:$0xff] (!%p270_p12)   ;;  %vm469_vm3 = vcmask (!%p270_p12), 523264   ;;  %v961_v42 = vld [vmem:[%s1251_s2 + $0x8] sm:$0xff] (!%p270_p12)  }
  0x23   : > { %v954_v8 = vld [vmem:[%s278_s21] sm:$0xff] (!%p270_p12)   ;;  %v955_v10 = vld [vmem:[%s278_s21 + $0x8] sm:$0x1f] (!%p270_p12)   ;;  %952 = vset.pattern.permute.xlu0 (!%p270_p12), %v1029_v15  ;;  %953 = vset.pattern.permute.xlu1 (!%p270_p12), %v1029_v15  ;;  %v688_v25 = vld [vmem:[#allocation2] sm:$0x1] (!%p270_p12)  ;;  %v1030_v45 = vmov (!%p270_p12), 0.0  }
  0x24   : > { %868 = vmatprep.subr.bf16.mxu0 (!%p270_p12), %v954_v8  ;;  %v366_v11 = vand.u32 (!%p270_p12), %v955_v10, %v364_v9  ;;  %888 = vmatprep.mubr.msk.bf16.mxu1 (!%p270_p12), %vm469_vm3, %v960_v16  ;;  %v551_v17 = vld [vmem:[%s1252_s3] sm:$0xf] (!%p270_p12)  ;;  %v553_v18 = vld [vmem:[%s1252_s3 + $0x8] sm:$0xf] (!%p270_p12)  ;;  %v552_v19 = vld [vmem:[%s1252_s3 + $0x4] sm:$0xf] (!%p270_p12) }
  0x25   : > { %869 = vmatpush3.bf16.msra.mxu0 (!%p270_p12), %v954_v8  ;;  %561 = vperm.xlu0 (!%p270_p12), %952, %v551_v17   ;;  %v554_v20 = vld [vmem:[%s1252_s3 + $0xc] sm:$0xf] (!%p270_p12)  ;;  %v555_v21 = vld [vmem:[%s1252_s3 + $0x10] sm:$0xf] (!%p270_p12)  ;;  %v556_v22 = vld [vmem:[%s1252_s3 + $0x14] sm:$0xf] (!%p270_p12) }
  0x26   : > { %870 = vmatprep.subr.bf16.mxu0 (!%p270_p12), %v366_v11  ;;  %585 = vperm.xlu1 (!%p270_p12), %953, %v553_v18   ;;  %v557_v23 = vld [vmem:[%s1252_s3 + $0x18] sm:$0xf] (!%p270_p12)  ;;  %v558_v24 = vld [vmem:[%s1252_s3 + $0x1c] sm:$0xf] (!%p270_p12)  ;;  %v962_v43 = vld [vmem:[%s1251_s2 + $0x10] sm:$0xff] (!%p270_p12)   ;;  %vm1031_vm4 = vmmov (!%p270_p12), 0  }
  0x27   : > { %v963_v44 = vld [vmem:[%s1251_s2 + $0x18] sm:$0xff] (!%p270_p12)   ;;  %v1032_v46 = vmov (!%p270_p12), 839922192   ;;  %v568_v52 = vshrl.u32 (!%p270_p12), %v567_v48, 7  ;;  %s846_s29 = sshll.u32 (!%p270_p12), %s815_s5, 4  ;;  %s303_s30 = scalar_lea.vmem (!%p270_p12), [#allocation4], %s1127_s17 }
  0x28   : > { %v565_v47 = vunpack.c.l.s4 %v1032_v46  ;;  %s755_s10 = sshll.u32 %s303_s30, 4  ;;  %s1206_s13 = scalar_lea.hbm %s1255_s6, %s846_s29  ;;  %s1208_s10 = int_to_ptr.vmem [resolvable:$true] %s755_s10 }
  0x29   : > { %871 = vmatpush3.bf16.msra.mxu0 %v366_v11  ;;  %573 = vperm.xlu0 %952, %v552_v19   ;;  %s743_s5 = scalar_lea.sflag [#allocation5], %s1127_s17  ;;  %s964_s14 = scalar_lea.vmem %s1208_s10, 16 }
  0x2a   : > { %597 = vperm.xlu1 %953, %v554_v20   ;;  %896 = vmatprep.subr.bf16.mxu0 %v1030_v45  ;;  %v566_v51 = vunpack.c.0.s8 %v565_v47  ;;  %p965_p13 = scmp.ne.s32.totalorder %s1208_s10, %s964_s14  ;;  %s1033_s15 = smov [#allocation4]  }
  0x2b   : > { %s968_s16 = sshll.u32 %s1033_s15, 4  ;;  %s969_s16 = int_to_ptr.vmem [resolvable:$false] %s968_s16 }
  0x2c   : > { %873 = vmatmul.mubr.msk.bf16.vlgmr.msra.gmra.mrb[0].mxu0 %vm348_vm2, %v957_v12  ;;  %v569_v54 = vsub.s32 %v566_v51, %v568_v52  ;;  %p966_p0 = pnand %p965_p13, %p1110_p6  ;;  %s970_s18 = scalar_lea.vmem %s969_s16, 32 }
  0x2d   : > { %876 = vmatprep.mubr.msk.bf16.mxu0 %vm348_vm2, %v958_v13  ;;  %609 = vperm.xlu0 %952, %v555_v21   ;;  %p971_p2 = scmp.lt.s32.totalorder %s1208_s10, %s969_s16  ;;  %p972_p3 = scmp.lt.s32.totalorder %s970_s18, %s964_s14 }
  0x2e   : > { %621 = vperm.xlu1 %953, %v556_v22   ;;  %p967_p1 = pneg %p966_p0 }
  0x2f   : > { %p973_p4 = por %p972_p3, %p971_p2 }
  0x31   : > { %633 = vperm.xlu0 %952, %v557_v23   ;;  %p974_p5 = pnand %p973_p4, %p967_p1 }
  0x32   : > { %645 = vperm.xlu1 %953, %v558_v24  }
  0x34   : > { %877 = vmatmul.mubr.msk.bf16.gmra.mrb[4].mxu0 %vm348_vm2, %v959_v14 }
  0x35   : > { %691 = vperm.xlu0 %952, %v688_v25   ;;  %904 = vmatprep.mubr.msk.bf16.mxu0 %vm1031_vm4, %v1030_v45 }
  0xa4   : > { %v562_v50 = vpop.permute.xlu0 %561 }
  0xa5   : > { %v586_v49 = vpop.permute.xlu1 %585  ;;  %v570_v56 = vrot.slane %v562_v50, %v569_v54 }
  0xa6   : > { %v594_v57 = vrot.slane %v586_v49, %v569_v54 }
  0xa8   : > { %v574_v55 = vpop.permute.xlu0 %573 }
  0xa9   : > { %v598_v53 = vpop.permute.xlu1 %597  ;;  %v582_v58 = vrot.slane %v574_v55, %v569_v54 }
  0xaa   : > { %v606_v59 = vrot.slane %v598_v53, %v569_v54 }
  0xab   : > { %v841_v3 = vcombine.low %v570_v56, %v582_v58 }
  0xac   : > { %v610_v0 = vpop.permute.xlu0 %609  ;;  %v842_v4 = vcombine.low %v594_v57, %v606_v59 }
  0xad   : > { %v622_v61 = vpop.permute.xlu1 %621  ;;  %v618_v8 = vrot.slane %v610_v0, %v569_v54 }
  0xae   : > { %v630_v9 = vrot.slane %v622_v61, %v569_v54 }
  0xb0   : > { %v634_v13 = vpop.permute.xlu0 %633  ;;  %v843_v21 = vcombine.low %v618_v8, %v630_v9 }
  0xb1   : > { %v646_v7 = vpop.permute.xlu1 %645  ;;  %v642_v16 = vrot.slane %v634_v13, %v569_v54 }
  0xb2   : > { %v654_v17 = vrot.slane %v646_v7, %v569_v54 }
  0xb4   : > { %v844_v24 = vcombine.low %v642_v16, %v654_v17 }
  0xff   : > { %v874_v26 = vpop.f32.mrb[0].mxu0 }
 0x100   : > { %v402_v27 = vpop.f32.mrb[1].mxu0 }
 0x101   : > { %v875_v28 = vpop.f32.mrb[2].mxu0 }
 0x102   : > { %v434_v29 = vpack.c.bf16 %v875_v28, %v874_v26  ;;  %v405_v30 = vpop.f32.mrb[3].mxu0 }
 0x103   : > { %v433_v31 = vpack.c.bf16 %v405_v30, %v402_v27  ;;  %v696_v30 = vsub.s32 0, %v568_v52 }
 0x104   : > { %v438_v33 = vmax.bf16 %v1029_v15, %v434_v29  ;;  %v687_v29 = vld [vmem:[%s1253_s4] sm:$0x1] }
 0x105   : > { %v437_v32 = vmax.bf16 %v1029_v15, %v433_v31  ;;  %v692_v31 = vpop.permute.xlu0 %691 }
 0x107   : > { %v878_v34 = vpop.f32.mrb[4].mxu0  ;;  %880 = vmatprep.subr.bf16.mxu1 %v437_v32 }
 0x108   : > { %v418_v35 = vpop.f32.mrb[5].mxu0  ;;  %881 = vmatpush3.bf16.msra.mxu1 %v437_v32  ;;  %v697_v32 = vrot.slane %v692_v31, %v696_v30 }
 0x109   : > { %v879_v36 = vpop.f32.mrb[6].mxu0  ;;  %882 = vmatprep.subr.bf16.mxu1 %v438_v33 }
 0x10a   : > { %v436_v37 = vpack.c.bf16 %v879_v36, %v878_v34  ;;  %v421_v38 = vpop.f32.mrb[7].mxu0 }
 0x10b   : > { %v435_v39 = vpack.c.bf16 %v421_v38, %v418_v35 }
 0x10c   : > { %883 = vmatpush3.bf16.msra.mxu1 %v438_v33  ;;  %v440_v41 = vmax.bf16 %v1029_v15, %v436_v37 }
 0x10d   : > { %v439_v40 = vmax.bf16 %v1029_v15, %v435_v39 }
 0x10f   : > { %884 = vmatprep.subr.bf16.mxu1 %v439_v40 }
 0x110   : > { %885 = vmatpush3.bf16.msra.mxu1 %v439_v40 }
 0x111   : > { %886 = vmatprep.subr.bf16.mxu1 %v440_v41 }
 0x114   : > { %887 = vmatpush3.bf16.msra.mxu1 %v440_v41 }
 0x117   : > { %889 = vmatmul.mubr.msk.bf16.vlgmr.msra.gmra.mrb[0].mxu1 %vm469_vm3, %v961_v42 }
 0x118   : > { %892 = vmatprep.mubr.msk.bf16.mxu1 %vm469_vm3, %v962_v43 }
 0x11f   : > { %893 = vmatmul.mubr.msk.bf16.gmra.mrb[4].mxu1 %vm469_vm3, %v963_v44 }
 0x1ea   : > { %v890_v60 = vpop.f32.mrb[0].mxu1 }
 0x1eb   : > { %v516_v62 = vpop.f32.mrb[1].mxu1 }
 0x1ec   : > { %v891_v63 = vpop.f32.mrb[2].mxu1 }
 0x1ed   : > { %v548_v1 = vpack.c.bf16 %v891_v63, %v890_v60  ;;  %v519_v2 = vpop.f32.mrb[3].mxu1 }
 0x1ee   : > { %v547_v5 = vpack.c.bf16 %v519_v2, %v516_v62 }
 0x1ef   : > { %v680_v10 = vadd.bf16 %v842_v4, %v548_v1 }
 0x1f0   : > { %v679_v6 = vadd.bf16 %v841_v3, %v547_v5 }
 0x1f1   : > { %v684_v22 = vmax.bf16 %v1029_v15, %v680_v10 }
 0x1f2   : > { %v683_v11 = vmax.bf16 %v1029_v15, %v679_v6  ;;  %v894_v12 = vpop.f32.mrb[4].mxu1 }
 0x1f3   : > { %v532_v14 = vpop.f32.mrb[5].mxu1 }
 0x1f4   : > { %v895_v18 = vpop.f32.mrb[6].mxu1  ;;  %897 = vmatpush3.bf16.msra.mxu0 %v683_v11 }
 0x1f5   : > { %v550_v19 = vpack.c.bf16 %v895_v18, %v894_v12  ;;  %v535_v20 = vpop.f32.mrb[7].mxu1  ;;  %898 = vmatprep.subr.bf16.mxu0 %v1030_v45 }
 0x1f6   : > { %v549_v23 = vpack.c.bf16 %v535_v20, %v532_v14 }
 0x1f7   : > { %v682_v26 = vadd.bf16 %v844_v24, %v550_v19 }
 0x1f8   : > { %v681_v25 = vadd.bf16 %v843_v21, %v549_v23  ;;  %899 = vmatpush3.bf16.msra.mxu0 %v684_v22 }
 0x1f9   : > { %900 = vmatprep.subr.bf16.mxu0 %v1030_v45  ;;  %v686_v28 = vmax.bf16 %v1029_v15, %v682_v26 }
 0x1fa   : > { %v685_v27 = vmax.bf16 %v1029_v15, %v681_v25 }
 0x1fc   : > { %901 = vmatpush3.bf16.msra.mxu0 %v685_v27 }
 0x1fd   : > { %902 = vmatprep.subr.bf16.mxu0 %v1030_v45 }
 0x200   : > { %903 = vmatpush3.bf16.msra.mxu0 %v686_v28 }
 0x203   : > { %905 = vmatmul.mubr.msk.bf16.vlgmr.msra.gmra.mrb[8].mxu0 %vm469_vm3, %v687_v29 }
 0x2d6   : > { %v735_v33 = vpop.f32.mrb[8].mxu0 }
 0x2d7   : > { %v736_v34 = vadd.f32 %v735_v33, %v697_v32  ;;  %v906_v35 = vpop.f32.mrb[9].mxu0 }
 0x2d8   : > { %v738_v15 = vpop.f32.mrb[10].mxu0 }
 0x2d9   : > { %741 = vst [vmem:[%s303_s30] sm:$0x1] %v736_v34  ;;  %v907_v36 = vpop.f32.mrb[11].mxu0 }
 0x2da   : > { %977 = shalt.err (!%p974_p5)
}
 0x2db   : > { %s978_s17 = scalar_lea.hbm %s1206_s13, 16  ;;  %s982_s21 = scalar_lea.hbm %s1255_s6, 48 }
 0x2dc   : > { %p979_p7 = scmp.ne.s32.totalorder %s1206_s13, %s978_s17  ;;  %p983_p11 = scmp.lt.u32.totalorder %s1206_s13, %s1255_s6 }
 0x2dd   : > { %p984_p12 = scmp.lt.u32.totalorder %s982_s21, %s978_s17  ;;  %p986_p0 = scmp.lt.u32.totalorder %s978_s17, %s1206_s13 }
 0x2de   : > { %p980_p9 = pnand %p979_p7, %p1110_p6 }
 0x2df   : > { %p985_p13 = por %p984_p12, %p983_p11 }
 0x2e0   : > { %p981_p10 = pneg %p980_p9 }
 0x2e1   : > { %p987_p1 = por %p986_p0, %p985_p13 }
 0x2e3   : > { %p988_p2 = pnand %p987_p1, %p981_p10 }
 0x2e5   : > { %991 = shalt.err (!%p988_p2)
}
 0x2e6   : > { %908 = dma.vmem_to_hbm [thread:$0]  (%p1110_p6), %s1208_s10, 16, %s1206_s13, %s743_s5  }
 0x2e7 PF: > { %p914_p3 = scmp.ge.s32.totalorder %s1026_s26, 2  ;;  %s767_s29 = sand.u32 1, %s1014_s23  }
 0x2e8   : > { %s768_s30 = scalar_lea.sflag [#allocation5], %s767_s29 }
 0x2e9   : > { %p911_p4 = pnand %p914_p3, %p1114_p8 }
 0x2eb   : > { %1009 = dma.done.wait (!%p911_p4), %s768_s30, 16  }
 0x2ec   : > { %1011 = vsyncadd (!%p911_p4), %s768_s30, 4294967280  ;;  %p18_p5 = scmp.ge.s32.totalorder %s1095_s28, 5   ;;  %s1258_s23 = smov %s1018_s24 }
 0x2ed   : > { %s1259_s24 = smov %s1022_s25  ;;  %s1260_s25 = smov %s1108_s7 }
 0x2ee   : > { %s1261_s26 = smov %s1095_s28  ;;  %20 = sbr.rel (!%p18_p5) target bundleno = 6 (0x6), region = 125 }
 0x2f5   :  { %772 = vsyncpa [#allocation5], 1 }
 0x2f6   :  { %774 = vsyncpa [#allocation5 + $0x1], 1 }

</bundles_post_ra>
